<compile_context>
chip_gen: v7x
topology: tpu7x:2x2x1
jax: 0.10.0
libtpu: 0.0.40
codegen_flags: <defaults>
</compile_context>

<pallas_src>
import functools

import jax
import jax.numpy as jnp
from jax.experimental import pallas as pl
from jax.experimental.pallas import tpu as pltpu

_EPS = 1e-6  # matches torch.nn.functional.pairwise_distance default eps


def _contrastive_kernel(B, TB, tiles_per_shard, full_tiles, needs_mask,
                        margin_ref, x1_ref, x2_ref, lbl_ref, out_ref):
    s = pl.program_id(0)                      # shard (core) index
    t = pl.program_id(1)                      # tile index within shard
    tile = s * tiles_per_shard + t            # logical (unclamped) batch tile

    @pl.when(t == 0)
    def _init():
        out_ref[...] = jnp.zeros_like(out_ref)

    x1 = x1_ref[...].astype(jnp.float32)      # (TB, D)
    x2 = x2_ref[...].astype(jnp.float32)      # (TB, D)
    lbl = lbl_ref[...].astype(jnp.float32)    # (TB, 1)
    margin = margin_ref[0, 0]                 # SMEM scalar

    diff = x1 - x2 + _EPS                     # pairwise_distance adds eps
    sq_sum = jnp.sum(diff * diff, axis=-1, keepdims=True)  # (TB, 1) = d^2
    d = jnp.sqrt(sq_sum)                      # euclidean distance per row
    hinge = jnp.maximum(margin - d, 0.0)      # clamp(margin - d, min=0)
    per_sample = (1.0 - lbl) * sq_sum + lbl * (hinge * hinge)  # (TB, 1)

    if needs_mask:
        # Only tiles at/after the first partial tile pay for masking; phantom
        # tiles (clamped DMA, fully past B) mask to zero contribution.
        @pl.when(tile < full_tiles)
        def _full():
            out_ref[...] += jnp.sum(per_sample, axis=0, keepdims=True)

        @pl.when(tile >= full_tiles)
        def _ragged():
            row = jax.lax.broadcasted_iota(jnp.int32, per_sample.shape, 0)
            valid = (row + tile * TB) < B
            out_ref[...] += jnp.sum(jnp.where(valid, per_sample, 0.0),
                                    axis=0, keepdims=True)
    else:
        out_ref[...] += jnp.sum(per_sample, axis=0, keepdims=True)


def _vmem_limit_bytes():
    """Generation-aware scoped-VMEM limit (v5e/v6e ~96 MiB, v7x ~48 MiB)."""
    try:
        cap = int(pltpu.get_tpu_info().vmem_capacity_bytes)
    except Exception:  # conservative fallback (v7x per-TC capacity)
        cap = 64 << 20
    return max(min((cap * 3) // 4, 96 << 20), 32 << 20)


def _choose_batch_tile(B, D, itemsize, working_budget):
    """Byte-targeted batch tile: >=4 MiB per input block, within VMEM budget."""
    min_rows = max(8, 32 // itemsize)           # (8,128) f32 / (16,128) bf16 min
    row_bytes = D * itemsize
    target = max((4 << 20) // row_bytes, min_rows)          # >= 4 MiB per block
    cap = max(working_budget // (4 * row_bytes), min_rows)  # 2 inputs x 2 bufs
    tb = max((min(target, cap) // min_rows) * min_rows, min_rows)
    if B <= tb:
        return B  # full-batch block is always a legal block shape
    return tb


def contrastive_loss(output1, output2, label, margin=2.0):
    """Pallas-TPU contrastive loss.

    output1, output2: (B, D) float arrays (f32 or bf16; kept in native dtype)
    label:            (B,) or (B, 1) array (0 = similar, 1 = dissimilar)
    returns: scalar float32 loss
    """
    B, D = output1.shape
    itemsize = jnp.dtype(output1.dtype).itemsize
    vmem_limit = _vmem_limit_bytes()
    TB = _choose_batch_tile(B, D, itemsize, vmem_limit - (8 << 20))

    num_tiles = pl.cdiv(B, TB)
    num_shards = 2 if num_tiles >= 2 else 1     # use both TCs on v7x
    tiles_per_shard = pl.cdiv(num_tiles, num_shards)
    needs_mask = (num_shards * tiles_per_shard * TB) != B
    full_tiles = B // TB

    label2d = jnp.asarray(label).reshape(B, 1).astype(jnp.float32)
    margin_arr = jnp.full((1, 1), margin, dtype=jnp.float32)

    def batch_map(s, t):
        # Clamp so phantom tiles (past the last real tile) DMA valid memory;
        # their contribution is masked to zero inside the kernel.
        tile = jnp.minimum(s * tiles_per_shard + t, num_tiles - 1)
        return (tile, 0)

    kernel = functools.partial(_contrastive_kernel, B, TB, tiles_per_shard,
                               full_tiles, needs_mask)

    partials = pl.pallas_call(
        kernel,
        out_shape=jax.ShapeDtypeStruct((num_shards, 1, 1), jnp.float32),
        grid_spec=pltpu.PrefetchScalarGridSpec(
            num_scalar_prefetch=0,
            grid=(num_shards, tiles_per_shard),
            in_specs=[
                pl.BlockSpec(memory_space=pltpu.MemorySpace.SMEM),  # margin
                pl.BlockSpec((TB, D), batch_map),                   # output1
                pl.BlockSpec((TB, D), batch_map),                   # output2
                pl.BlockSpec((TB, 1), batch_map),                   # label
            ],
            # Per-shard resident accumulator; leading shard dim squeezed.
            out_specs=pl.BlockSpec((None, 1, 1), lambda s, t: (s, 0, 0)),
        ),
        compiler_params=pltpu.CompilerParams(
            # Shard axis is parallel (megacore); accumulation axis sequential.
            dimension_semantics=("parallel", "arbitrary"),
            vmem_limit_bytes=vmem_limit,
        ),
    )(margin_arr, output1, output2, label2d)

    # Cross-shard reduction + mean over the true batch in the wrapper.
    return jnp.sum(partials) * (1.0 / B)


def _reference(output1, output2, label, margin=2.0):
    diff = output1.astype(jnp.float32) - output2.astype(jnp.float32) + _EPS
    d = jnp.sqrt(jnp.sum(diff * diff, axis=-1))
    hinge = jnp.maximum(margin - d, 0.0)
    return jnp.mean((1.0 - label) * d * d + label * hinge * hinge)


if __name__ == "__main__":
    key = jax.random.PRNGKey(0)
    k1, k2, k3 = jax.random.split(key, 3)

    # Small shapes consistent with a siamese-embedding contrastive loss.
    B, D = 8, 32
    x1 = jax.random.normal(k1, (B, D), dtype=jnp.float32)
    x2 = jax.random.normal(k2, (B, D), dtype=jnp.float32)
    lbl = jax.random.bernoulli(k3, 0.5, (B,)).astype(jnp.float32)

    loss = jax.block_until_ready(contrastive_loss(x1, x2, lbl, margin=2.0))
    ref = _reference(x1, x2, lbl, margin=2.0)
    assert jnp.allclose(loss, ref, rtol=1e-5, atol=1e-5), (loss, ref)

    # Multi-shard + ragged + phantom-tile path: D=4096 f32 -> TB=256 rows;
    # B=700 -> 3 real tiles over a (2 shards x 2 tiles) grid (1 phantom tile).
    k4, k5, k6 = jax.random.split(jax.random.PRNGKey(1), 3)
    B2, D2 = 700, 4096
    y1 = jax.random.normal(k4, (B2, D2), dtype=jnp.float32)
    y2 = jax.random.normal(k5, (B2, D2), dtype=jnp.float32)
    lbl2 = jax.random.bernoulli(k6, 0.5, (B2,)).astype(jnp.float32)

    loss2 = jax.block_until_ready(contrastive_loss(y1, y2, lbl2, margin=2.0))
    ref2 = _reference(y1, y2, lbl2, margin=2.0)
    assert jnp.allclose(loss2, ref2, rtol=1e-4, atol=1e-5), (loss2, ref2)

    # Native-dtype (bf16) path: cast happens inside the kernel, not the wrapper.
    k7, k8, k9 = jax.random.split(jax.random.PRNGKey(2), 3)
    B3, D3 = 48, 256
    z1 = jax.random.normal(k7, (B3, D3), dtype=jnp.bfloat16)
    z2 = jax.random.normal(k8, (B3, D3), dtype=jnp.bfloat16)
    lbl3 = jax.random.bernoulli(k9, 0.5, (B3,)).astype(jnp.float32)

    loss3 = jax.block_until_ready(contrastive_loss(z1, z2, lbl3, margin=2.0))
    ref3 = _reference(z1, z2, lbl3, margin=2.0)
    assert jnp.allclose(loss3, ref3, rtol=1e-4, atol=1e-5), (loss3, ref3)

    print("KERNEL_OK")
</pallas_src>

<mosaic_0001>
module attributes {stable_mosaic.version = 11 : i64} {
  func.func @_contrastive_kernel(%arg0: i32, %arg1: i32, %arg2: memref<1x1xf32, #tpu.memory_space<smem>>, %arg3: memref<8x32xf32, #tpu.memory_space<vmem>>, %arg4: memref<8x32xf32, #tpu.memory_space<vmem>>, %arg5: memref<8x1xf32, #tpu.memory_space<vmem>>, %arg6: memref<1x1x1xf32, #tpu.memory_space<vmem>>) attributes {dimension_semantics = [#tpu.dimension_semantics<parallel>, #tpu.dimension_semantics<arbitrary>], iteration_bounds = array<i64: 1, 1>, scalar_prefetch = 0 : i64, scratch_operands = 0 : i64, tpu.core_type = #tpu.core_type<tc>, window_params = [{transform_indices = @transform_0, window_bounds = array<i64: 1, 1>}, {transform_indices = @transform_1, window_bounds = array<i64: 8, 32>}, {transform_indices = @transform_2, window_bounds = array<i64: 8, 32>}, {transform_indices = @transform_3, window_bounds = array<i64: 8, 1>}, {transform_indices = @transform_4, window_bounds = array<i64: 1, 1, 1>}]} {
    %c0_i32 = arith.constant 0 : i32
    %0 = arith.cmpi eq, %arg1, %c0_i32 : i32
    %1 = arith.extui %0 : i1 to i32
    %c0_i32_0 = arith.constant 0 : i32
    %2 = arith.cmpi ne, %1, %c0_i32_0 : i32
    scf.if %2 {
      %cst_18 = arith.constant 0.000000e+00 : f32
      %32 = vector.broadcast %cst_18 : f32 to vector<1x1xf32>
      %c0_19 = arith.constant 0 : index
      %c0_20 = arith.constant 0 : index
      %c0_21 = arith.constant 0 : index
      %33 = vector.load %arg6[%c0_19, %c0_20, %c0_21] : memref<1x1x1xf32, #tpu.memory_space<vmem>>, vector<1x1x1xf32>
      %34 = vector.shape_cast %33 : vector<1x1x1xf32> to vector<1x1xf32>
      %35 = vector.shape_cast %32 : vector<1x1xf32> to vector<1x1x1xf32>
      tpu.vector_store %arg6[%c0_19, %c0_20, %c0_21], %35 {strides = array<i32>} : memref<1x1x1xf32, #tpu.memory_space<vmem>>, vector<1x1x1xf32>,
    } else {
    }
    %c0 = arith.constant 0 : index
    %c0_1 = arith.constant 0 : index
    %3 = vector.load %arg3[%c0, %c0_1] : memref<8x32xf32, #tpu.memory_space<vmem>>, vector<8x32xf32>
    %c0_2 = arith.constant 0 : index
    %c0_3 = arith.constant 0 : index
    %4 = vector.load %arg4[%c0_2, %c0_3] : memref<8x32xf32, #tpu.memory_space<vmem>>, vector<8x32xf32>
    %c0_4 = arith.constant 0 : index
    %c0_5 = arith.constant 0 : index
    %5 = vector.load %arg5[%c0_4, %c0_5] : memref<8x1xf32, #tpu.memory_space<vmem>>, vector<8x1xf32>
    %c0_6 = arith.constant 0 : index
    %c0_7 = arith.constant 0 : index
    %6 = memref.load %arg2[%c0_6, %c0_7] : memref<1x1xf32, #tpu.memory_space<smem>>
    %7 = arith.subf %3, %4 : vector<8x32xf32>
    %cst = arith.constant 9.99999997E-7 : f32
    %8 = vector.broadcast %cst : f32 to vector<8x32xf32>
    %9 = arith.addf %7, %8 : vector<8x32xf32>
    %10 = arith.mulf %9, %9 : vector<8x32xf32>
    %cst_8 = arith.constant dense<0.000000e+00> : vector<8xf32>
    %11 = vector.multi_reduction <add>, %10, %cst_8 [1] : vector<8x32xf32> to vector<8xf32>
    %12 = vector.shape_cast %11 : vector<8xf32> to vector<8x1xf32>
    %13 = math.sqrt %12 : vector<8x1xf32>
    %14 = vector.broadcast %6 : f32 to vector<8x1xf32>
    %15 = arith.subf %14, %13 : vector<8x1xf32>
    %cst_9 = arith.constant 0.000000e+00 : f32
    %16 = vector.broadcast %cst_9 : f32 to vector<8x1xf32>
    %17 = arith.maximumf %15, %16 : vector<8x1xf32>
    %cst_10 = arith.constant 1.000000e+00 : f32
    %18 = vector.broadcast %cst_10 : f32 to vector<8x1xf32>
    %19 = arith.subf %18, %5 : vector<8x1xf32>
    %20 = arith.mulf %19, %12 : vector<8x1xf32>
    %21 = arith.mulf %17, %17 : vector<8x1xf32>
    %22 = arith.mulf %5, %21 : vector<8x1xf32>
    %23 = arith.addf %20, %22 : vector<8x1xf32>
    %c0_11 = arith.constant 0 : index
    %c0_12 = arith.constant 0 : index
    %c0_13 = arith.constant 0 : index
    %24 = vector.load %arg6[%c0_11, %c0_12, %c0_13] : memref<1x1x1xf32, #tpu.memory_space<vmem>>, vector<1x1x1xf32>
    %25 = vector.shape_cast %24 : vector<1x1x1xf32> to vector<1x1xf32>
    %cst_14 = arith.constant dense<0.000000e+00> : vector<1xf32>
    %26 = vector.multi_reduction <add>, %23, %cst_14 [0] : vector<8x1xf32> to vector<1xf32>
    %27 = vector.shape_cast %26 : vector<1xf32> to vector<1x1xf32>
    %28 = arith.addf %25, %27 : vector<1x1xf32>
    %c0_15 = arith.constant 0 : index
    %c0_16 = arith.constant 0 : index
    %c0_17 = arith.constant 0 : index
    %29 = vector.load %arg6[%c0_15, %c0_16, %c0_17] : memref<1x1x1xf32, #tpu.memory_space<vmem>>, vector<1x1x1xf32>
    %30 = vector.shape_cast %29 : vector<1x1x1xf32> to vector<1x1xf32>
    %31 = vector.shape_cast %28 : vector<1x1xf32> to vector<1x1x1xf32>
    tpu.vector_store %arg6[%c0_15, %c0_16, %c0_17], %31 {strides = array<i32>} : memref<1x1x1xf32, #tpu.memory_space<vmem>>, vector<1x1x1xf32>,
    return
  }
  func.func @transform_0(%arg0: i32, %arg1: i32) -> (i32, i32) {
    %c0_i32 = arith.constant 0 : i32
    %c0_i32_0 = arith.constant 0 : i32
    %c0_i32_1 = arith.constant 0 : i32
    return %c0_i32, %c0_i32_0 : i32, i32
  }
  func.func @transform_1(%arg0: i32, %arg1: i32) -> (i32, i32) {
    %c1_i32 = arith.constant 1 : i32
    %0 = arith.muli %arg0, %c1_i32 : i32
    %1 = arith.addi %0, %arg1 : i32
    %c0_i32 = arith.constant 0 : i32
    %2 = arith.minsi %1, %c0_i32 : i32
    %c0_i32_0 = arith.constant 0 : i32
    %c0_i32_1 = arith.constant 0 : i32
    return %2, %c0_i32_0 : i32, i32
  }
  func.func @transform_2(%arg0: i32, %arg1: i32) -> (i32, i32) {
    %c1_i32 = arith.constant 1 : i32
    %0 = arith.muli %arg0, %c1_i32 : i32
    %1 = arith.addi %0, %arg1 : i32
    %c0_i32 = arith.constant 0 : i32
    %2 = arith.minsi %1, %c0_i32 : i32
    %c0_i32_0 = arith.constant 0 : i32
    %c0_i32_1 = arith.constant 0 : i32
    return %2, %c0_i32_0 : i32, i32
  }
  func.func @transform_3(%arg0: i32, %arg1: i32) -> (i32, i32) {
    %c1_i32 = arith.constant 1 : i32
    %0 = arith.muli %arg0, %c1_i32 : i32
    %1 = arith.addi %0, %arg1 : i32
    %c0_i32 = arith.constant 0 : i32
    %2 = arith.minsi %1, %c0_i32 : i32
    %c0_i32_0 = arith.constant 0 : i32
    %c0_i32_1 = arith.constant 0 : i32
    return %2, %c0_i32_0 : i32, i32
  }
  func.func @transform_4(%arg0: i32, %arg1: i32) -> (i32, i32, i32) {
    %c0_i32 = arith.constant 0 : i32
    %c0_i32_0 = arith.constant 0 : i32
    %c0_i32_1 = arith.constant 0 : i32
    return %arg0, %c0_i32, %c0_i32_0 : i32, i32, i32
  }
}

</mosaic_0001>

<bundles_post_ra>
// kernel: tpu_custom_call.1
= control target key start
LH: loop header
LB: loop body
LE: loop exit
PB: predicated region body
PF: predicated region fallthrough
CT: control target
= control target key end

     0   :  { %s257_s0 = inlined_call_operand.<no memory space> [shape: f32[1,1], index: 0, kind: input, shape index: {}]   ;;  %s258_s1 = inlined_call_operand.vmem [shape: f32[8,32], index: 1, kind: input, shape index: {}]   ;;  %s259_s2 = inlined_call_operand.vmem [shape: f32[8,32], index: 2, kind: input, shape index: {}]   ;;  %s260_s3 = inlined_call_operand.vmem [shape: f32[8,1], index: 3, kind: input, shape index: {}]   ;;  %s261_s4 = inlined_call_operand.hbm [shape: f32[1,1,1], index: 4, kind: output, shape index: {}]  }
   0x1   :  { %v106_v0 = vld [vmem:[%s258_s1] sm:$0xff] }
   0x2   :  { %v107_v1 = vld [vmem:[%s259_s2] sm:$0xff] }
   0x3   :  { %v110_v2 = vsub.f32 %v106_v0, %v107_v1 }
   0x4   :  { %10 = vsyncpa [#allocation4], 0  ;;  %vm113_vm0 = vcmask 261120   ;;  %vm104_vm1 = vcmask 0   ;;  %v204_v6 = vmov 0.0   ;;  %v124_v11 = vstv %s257_s0  ;;  %v108_v13 = vld [vmem:[%s260_s3] sm:$0xff] }
   0x5   :  { %v111_v3 = vadd.f32 1e-06, %v110_v2  ;;  %105 = vst.msk [vmem:[#allocation3] sm:$0x1] %vm104_vm1, %v204_v6  ;;  %v127_v17 = vsub.f32 1.0, %v108_v13  ;;  %vm133_vm4 = vcmask 7168  }
   0x6   :  { %s205_s0 = smov [#allocation3]  }
   0x7   :  { %v112_v4 = vmul.f32 %v111_v3, %v111_v3  ;;  %s150_s21 = sshll.u32 %s205_s0, 4  ;;  %s151_s21 = int_to_ptr.vmem [resolvable:$true] %s150_s21 }
   0x8   :  { %s180_s3 = scalar_lea.vmem %s151_s21, 16  ;;  %s184_s22 = scalar_lea.vmem %s151_s21, 32 }
   0x9   :  { %v114_v5 = vsel %vm113_vm0, %v112_v4, 0.0  ;;  %p181_p0 = scmp.ne.s32.totalorder %s151_s21, %s180_s3  ;;  %p185_p1 = scmp.lt.s32.totalorder %s151_s21, %s151_s21 }
   0xa   :  { %115 = vadd.xlane.f32.xlu0 %v114_v5  ;;  %p186_p2 = scmp.lt.s32.totalorder %s184_s22, %s180_s3 }
   0xc   :  { %v132_v28 = vld [vmem:[#allocation3] sm:$0x1]  ;;  %p187_p3 = por %p186_p2, %p185_p1 }
   0xe   :  { %p188_p4 = pnand %p187_p3, %p181_p0 }
  0x97   :  { %v116_v7 = vpop.xlane.xlu0 %115 }
  0x98   :  { %178 = vrsqrt.f32 %v116_v7  ;;  %vm119_vm2 = vcmp.eq.f32.partialorder %v116_v7, inf  ;;  %v122_v10 = vand.u32 2147483648, %v116_v7  ;;  %vm121_vm3 = vcmp.eq.f32.partialorder %v116_v7, 0.0 }
  0x99   :  { %v128_v19 = vmul.f32 %v127_v17, %v116_v7 }
  0xa2   :  { %v179_v8 = vpop.eup %178 }
  0xa3   :  { %v118_v9 = vmul.f32 %v179_v8, %v116_v7 }
  0xa5   :  { %v120_v12 = vsel %vm119_vm2, %v116_v7, %v118_v9 }
  0xa6   :  { %v123_v14 = vsel %vm121_vm3, %v122_v10, %v120_v12 }
  0xa7   :  { %v125_v15 = vsub.f32 %v124_v11, %v123_v14 }
  0xa9   :  { %v126_v16 = vmax.f32 %v125_v15, 0.0 }
  0xab   :  { %v129_v18 = vmul.f32 %v126_v16, %v126_v16 }
  0xad   :  { %v130_v20 = vmul.f32 %v129_v18, %v108_v13 }
  0xaf   :  { %v131_v21 = vadd.f32 %v130_v20, %v128_v19 }
  0xb1   :  { %v134_v22 = vsel %vm133_vm4, %v131_v21, 0.0 }
  0xb2   :  { %v135_v23 = vrot.slane %v134_v22, 4 }
  0xb4   :  { %v136_v24 = vadd.f32 %v135_v23, %v134_v22 }
  0xb6   :  { %v137_v25 = vrot.slane %v136_v24, 2 }
  0xb8   :  { %v138_v26 = vadd.f32 %v137_v25, %v136_v24 }
  0xba   :  { %v139_v27 = vrot.slane %v138_v26, 1 }
  0xbc   :  { %v140_v29 = vadd.f32 %v139_v27, %v138_v26 }
  0xbe   :  { %v141_v30 = vadd.f32 %v140_v29, %v132_v28 }
  0xc0   :  { %143 = vst.msk [vmem:[#allocation3] sm:$0x1] %vm104_vm1, %v141_v30 }
  0xc1   :  { %191 = shalt.err (!%p188_p4)
}
  0xc2   :  { %s192_s25 = scalar_lea.hbm %s261_s4, 16 }
  0xc3   :  { %p193_p5 = scmp.ne.s32.totalorder %s261_s4, %s192_s25  ;;  %p196_p6 = scmp.lt.u32.totalorder %s192_s25, %s261_s4 }
  0xc5   :  { %p198_p7 = pnand %p196_p6, %p193_p5 }
  0xc7   :  { %201 = shalt.err (!%p198_p7)
}
  0xc8   :  { %153 = dma.vmem_to_hbm [thread:$0]  %s151_s21, 16, %s261_s4, [#allocation4]  }
  0xc9   :  { %202 = dma.done.wait [#allocation4], 16  }
  0xca   :  { %203 = vsyncadd [#allocation4], 4294967280 }
  0xcb   :  { %157 = vsyncpa [#allocation4], 1 }

</bundles_post_ra>
